<compile_context>
chip_gen: v7x
topology: tpu7x:2x2x1
jax: 0.10.0
libtpu: 0.0.40
codegen_flags: <defaults>
</compile_context>

<pallas_src>
import functools

import jax
import jax.numpy as jnp
from jax.experimental import pallas as pl
from jax.experimental.pallas import tpu as pltpu


def _cdiv(a, b):
    return -(-a // b)


def _round_up(x, m):
    return ((x + m - 1) // m) * m


def _even_split(total, max_block, multiple):
    """Split `total` into equal chunks <= ~max_block, each a multiple of `multiple`.

    Returns (chunk, padded_total) with padded_total = chunk * num_chunks >= total.
    """
    total_r = _round_up(max(int(total), 1), multiple)
    n = max(1, _cdiv(total_r, max_block))
    chunk = _round_up(_cdiv(total_r, n), multiple)
    return chunk, chunk * n


def _tpu_generation_config():
    """Per-generation tile/VMEM knobs (safe fallback if the kind is unknown)."""
    try:
        kind = jax.devices()[0].device_kind.lower()
    except Exception:  # pragma: no cover
        kind = ""
    if "v7" in kind:
        # v7x: 64 MiB VMEM per TensorCore -> stay well under it.
        return {"vmem_limit": 48 * 1024 * 1024, "max_tb": 512}
    if "v5" in kind or "v6" in kind:
        # v5e / v6e: 128 MiB physical VMEM -> allow more reuse.
        return {"vmem_limit": 96 * 1024 * 1024, "max_tb": 1024}
    # Unknown generation: conservative (v7x-safe) settings.
    return {"vmem_limit": 48 * 1024 * 1024, "max_tb": 512}


_CFG = _tpu_generation_config()


def _linear_relu_kernel(x_ref, w_ref, b_ref, o_ref, acc_ref):
    # x_ref: (tb, tk), w_ref: (tk, tn), b_ref: (1, tn), o_ref: (tb, tn)
    # acc_ref: (tb, tn) f32 accumulator, resident across the K grid axis (P3).
    @pl.when(pl.program_id(2) == 0)
    def _():
        acc_ref[...] = jnp.zeros_like(acc_ref)

    acc_ref[...] += jnp.dot(
        x_ref[...], w_ref[...], preferred_element_type=jnp.float32
    )

    @pl.when(pl.program_id(2) == pl.num_programs(2) - 1)
    def _():
        # Bias add + ReLU in f32 (free under MXU slack; v5e-safe epilogue).
        y = acc_ref[...] + b_ref[...]
        o_ref[...] = jnp.maximum(y, 0.0).astype(o_ref.dtype)


def prepare_linear_params(
    weight, bias, *, compute_dtype=jnp.bfloat16, block_n=512, block_k=2048
):
    """One-time parameter prep (call at init, NOT per forward call).

    weight: [output_size, input_size]  (PyTorch nn.Linear layout)
    bias:   [output_size]

    Returns (w_t, bias2d, meta):
      w_t    : [Kp, Np]  weight.T, zero-padded so (tk, tn) divide exactly, in
               compute_dtype (bf16 by default -> half the W DMA bytes).
      bias2d : [1,  Np]  zero-padded bias, f32 (epilogue dtype).
      meta   : dict with out_features / in_features / tn / tk.
    """
    N, K = weight.shape
    tk, Kp = _even_split(K, block_k, 128)
    tn, Np = _even_split(N, block_n, 128)
    w_dtype = compute_dtype if compute_dtype is not None else weight.dtype
    w_t = jnp.zeros((Kp, Np), w_dtype).at[:K, :N].set(weight.T.astype(w_dtype))
    bias2d = jnp.zeros((1, Np), jnp.float32).at[0, :N].set(bias.astype(jnp.float32))
    meta = {"out_features": int(N), "in_features": int(K), "tn": int(tn), "tk": int(tk)}
    return w_t, bias2d, meta


@functools.partial(
    jax.jit,
    static_argnames=(
        "out_features", "in_features", "tn", "tk",
        "block_b", "compute_dtype", "out_dtype",
    ),
)
def _linear_block_fwd(
    x, w_t, bias2d, *, out_features, in_features, tn, tk,
    block_b, compute_dtype, out_dtype,
):
    B, K = x.shape
    Kp, Np = w_t.shape
    assert K == in_features
    assert Kp % tk == 0 and Np % tn == 0
    assert tn % 128 == 0 and tk % 128 == 0

    cdt = jnp.dtype(compute_dtype) if compute_dtype is not None else x.dtype
    # Packed sublane tile: 8 sublanes for 32-bit, 16 for bf16, 32 for 8-bit.
    sub = 8 if cdt.itemsize >= 4 else (32 if cdt.itemsize == 1 else 16)

    # Even ragged-batch split: chunks as equal as possible, <= ~block_b.
    num_b = max(1, _cdiv(B, block_b))
    tb = _round_up(_cdiv(B, num_b), sub)
    Bp = tb * num_b

    # Cast once (narrow dtype), then pad only if actually needed.
    x_c = x if x.dtype == cdt else x.astype(cdt)
    if Bp != B or Kp != K:
        x_c = jnp.pad(x_c, ((0, Bp - B), (0, Kp - K)))

    grid = (Bp // tb, Np // tn, Kp // tk)

    out_dt = jnp.dtype(out_dtype)
    cost = pl.CostEstimate(
        flops=2 * Bp * Kp * Np,
        transcendentals=0,
        bytes_accessed=(
            Bp * Kp * cdt.itemsize          # x
            + Kp * Np * w_t.dtype.itemsize  # W^T
            + Np * 4                        # bias
            + Bp * Np * out_dt.itemsize     # out
        ),
    )

    out = pl.pallas_call(
        _linear_relu_kernel,
        out_shape=jax.ShapeDtypeStruct((Bp, Np), out_dt),
        grid_spec=pltpu.PrefetchScalarGridSpec(
            num_scalar_prefetch=0,
            grid=grid,
            in_specs=[
                pl.BlockSpec((tb, tk), lambda i, j, k: (i, k)),  # x tile
                pl.BlockSpec((tk, tn), lambda i, j, k: (k, j)),  # W^T tile
                pl.BlockSpec((1, tn), lambda i, j, k: (0, j)),   # bias tile
            ],
            out_specs=pl.BlockSpec((tb, tn), lambda i, j, k: (i, j)),
            scratch_shapes=[pltpu.VMEM((tb, tn), jnp.float32)],
        ),
        compiler_params=pltpu.CompilerParams(
            # K (reduction) last + "arbitrary"; batch/N both "parallel" so the
            # megacore partitioner can split whichever parallel axis has >1 block
            # (covers the Bp//tb == 1 case on v7x by splitting N instead).
            dimension_semantics=("parallel", "parallel", "arbitrary"),
            vmem_limit_bytes=_CFG["vmem_limit"],
        ),
        cost_estimate=cost,
    )(x_c, w_t, bias2d)

    return out[:B, :out_features]


def linear_block_forward(
    x, w_t, bias2d, meta, *, block_b=None, compute_dtype=jnp.bfloat16, out_dtype=None
):
    """relu(x @ W^T + bias), matching torch.nn.Linear + ReLU.

    x:      [B, input_size]
    w_t:    [Kp, Np]  pre-transposed + padded weight from prepare_linear_params
    bias2d: [1,  Np]  padded f32 bias
    meta:   dict from prepare_linear_params
    """
    if block_b is None:
        block_b = _CFG["max_tb"]
    return _linear_block_fwd(
        x, w_t, bias2d,
        out_features=meta["out_features"],
        in_features=meta["in_features"],
        tn=meta["tn"], tk=meta["tk"],
        block_b=int(block_b),
        compute_dtype=compute_dtype,
        out_dtype=(out_dtype if out_dtype is not None else x.dtype),
    )


def init_linear_params(key, input_size, output_size, dtype=jnp.float32):
    """Deterministic init mirroring torch.nn.Linear defaults (uniform +/- 1/sqrt(fan_in))."""
    kw, kb = jax.random.split(key)
    bound = 1.0 / (input_size ** 0.5)
    weight = jax.random.uniform(
        kw, (output_size, input_size), dtype, minval=-bound, maxval=bound
    )
    bias = jax.random.uniform(kb, (output_size,), dtype, minval=-bound, maxval=bound)
    return weight, bias


if __name__ == "__main__":
    key = jax.random.PRNGKey(0)
    k_x1, k_p1, k_x2, k_p2 = jax.random.split(key, 4)

    # --- Case 1: lane-aligned shapes, default bf16 compute path. ---
    B1, K1, N1 = 32, 128, 256
    x1 = jax.random.normal(k_x1, (B1, K1), dtype=jnp.float32)
    w1, b1 = init_linear_params(k_p1, K1, N1)
    w_t1, bias1, meta1 = prepare_linear_params(w1, b1)  # bf16 weights by default

    out1 = jax.block_until_ready(linear_block_forward(x1, w_t1, bias1, meta1))
    ref1 = jnp.maximum(x1 @ w1.T + b1, 0.0)
    assert out1.shape == (B1, N1)
    # bf16 inputs / f32 accumulation: loose tolerance vs. the f32 reference.
    assert jnp.allclose(out1, ref1, atol=2e-2, rtol=2e-2), "mismatch (bf16 path)"

    # --- Case 2: small unaligned shapes (exercises B/K/N padding), bf16 path. ---
    B2, K2, N2 = 8, 32, 64
    x2 = jax.random.normal(k_x2, (B2, K2), dtype=jnp.float32)
    w2, b2 = init_linear_params(k_p2, K2, N2)
    w_t2, bias2, meta2 = prepare_linear_params(w2, b2)

    out2 = jax.block_until_ready(linear_block_forward(x2, w_t2, bias2, meta2))
    ref2 = jnp.maximum(x2 @ w2.T + b2, 0.0)
    assert out2.shape == (B2, N2)
    assert jnp.allclose(out2, ref2, atol=2e-2, rtol=2e-2), "mismatch (padded bf16 path)"

    # --- Case 3: opt-in f32 compute path for exactness-sensitive callers. ---
    w_t2f, bias2f, meta2f = prepare_linear_params(w2, b2, compute_dtype=jnp.float32)
    out3 = jax.block_until_ready(
        linear_block_forward(x2, w_t2f, bias2f, meta2f, compute_dtype=jnp.float32)
    )
    assert jnp.allclose(out3, ref2, atol=1e-5, rtol=1e-5), "mismatch (f32 path)"

    print("KERNEL_OK")
</pallas_src>

<mosaic_0001>
module attributes {stable_mosaic.version = 11 : i64} {
  func.func @_linear_relu_kernel(%arg0: i32, %arg1: i32, %arg2: i32, %arg3: memref<32x128xbf16, #tpu.memory_space<vmem>>, %arg4: memref<128x256xbf16, #tpu.memory_space<vmem>>, %arg5: memref<1x256xf32, #tpu.memory_space<vmem>>, %arg6: memref<32x256xf32, #tpu.memory_space<vmem>>, %arg7: memref<32x256xf32, #tpu.memory_space<vmem>>) attributes {dimension_semantics = [#tpu.dimension_semantics<parallel>, #tpu.dimension_semantics<parallel>, #tpu.dimension_semantics<arbitrary>], iteration_bounds = array<i64: 1, 1, 1>, scalar_prefetch = 0 : i64, scratch_operands = 1 : i64, tpu.core_type = #tpu.core_type<tc>, window_params = [{transform_indices = @transform_0, window_bounds = array<i64: 32, 128>}, {transform_indices = @transform_1, window_bounds = array<i64: 128, 256>}, {transform_indices = @transform_2, window_bounds = array<i64: 1, 256>}, {transform_indices = @transform_3, window_bounds = array<i64: 32, 256>}]} {
    %c0_i32 = arith.constant 0 : i32
    %0 = arith.cmpi eq, %arg2, %c0_i32 : i32
    %1 = arith.extui %0 : i1 to i32
    %c0_i32_0 = arith.constant 0 : i32
    %2 = arith.cmpi ne, %1, %c0_i32_0 : i32
    scf.if %2 {
      %cst_10 = arith.constant 0.000000e+00 : f32
      %12 = vector.broadcast %cst_10 : f32 to vector<32x256xf32>
      %c0_11 = arith.constant 0 : index
      %c0_12 = arith.constant 0 : index
      %13 = vector.load %arg7[%c0_11, %c0_12] : memref<32x256xf32, #tpu.memory_space<vmem>>, vector<32x256xf32>
      tpu.vector_store %arg7[%c0_11, %c0_12], %12 {strides = array<i32>} : memref<32x256xf32, #tpu.memory_space<vmem>>, vector<32x256xf32>,
    } else {
    }
    %c0 = arith.constant 0 : index
    %c0_1 = arith.constant 0 : index
    %3 = vector.load %arg7[%c0, %c0_1] : memref<32x256xf32, #tpu.memory_space<vmem>>, vector<32x256xf32>
    %c0_2 = arith.constant 0 : index
    %c0_3 = arith.constant 0 : index
    %4 = vector.load %arg3[%c0_2, %c0_3] : memref<32x128xbf16, #tpu.memory_space<vmem>>, vector<32x128xbf16>
    %c0_4 = arith.constant 0 : index
    %c0_5 = arith.constant 0 : index
    %5 = vector.load %arg4[%c0_4, %c0_5] : memref<128x256xbf16, #tpu.memory_space<vmem>>, vector<128x256xbf16>
    %cst = arith.constant dense<0.000000e+00> : vector<32x256xf32>
    %6 = tpu.matmul %4, %5, %cst {dimension_numbers = #tpu.dot_dimension_numbers<[1], [0], [0], [1], [0, 0, 1, 1], [], []>} : vector<32x128xbf16>, vector<128x256xbf16>, vector<32x256xf32> -> vector<32x256xf32>
    %7 = arith.addf %3, %6 : vector<32x256xf32>
    %c0_6 = arith.constant 0 : index
    %c0_7 = arith.constant 0 : index
    %8 = vector.load %arg7[%c0_6, %c0_7] : memref<32x256xf32, #tpu.memory_space<vmem>>, vector<32x256xf32>
    tpu.vector_store %arg7[%c0_6, %c0_7], %7 {strides = array<i32>} : memref<32x256xf32, #tpu.memory_space<vmem>>, vector<32x256xf32>,
    %c0_i32_8 = arith.constant 0 : i32
    %9 = arith.cmpi eq, %arg2, %c0_i32_8 : i32
    %10 = arith.extui %9 : i1 to i32
    %c0_i32_9 = arith.constant 0 : i32
    %11 = arith.cmpi ne, %10, %c0_i32_9 : i32
    scf.if %11 {
      %c0_10 = arith.constant 0 : index
      %c0_11 = arith.constant 0 : index
      %12 = vector.load %arg7[%c0_10, %c0_11] : memref<32x256xf32, #tpu.memory_space<vmem>>, vector<32x256xf32>
      %c0_12 = arith.constant 0 : index
      %c0_13 = arith.constant 0 : index
      %13 = vector.load %arg5[%c0_12, %c0_13] : memref<1x256xf32, #tpu.memory_space<vmem>>, vector<1x256xf32>
      %14 = vector.broadcast %13 : vector<1x256xf32> to vector<32x256xf32>
      %15 = arith.addf %12, %14 : vector<32x256xf32>
      %cst_14 = arith.constant 0.000000e+00 : f32
      %16 = vector.broadcast %cst_14 : f32 to vector<32x256xf32>
      %17 = arith.maximumf %15, %16 : vector<32x256xf32>
      %c0_15 = arith.constant 0 : index
      %c0_16 = arith.constant 0 : index
      %18 = vector.load %arg6[%c0_15, %c0_16] : memref<32x256xf32, #tpu.memory_space<vmem>>, vector<32x256xf32>
      tpu.vector_store %arg6[%c0_15, %c0_16], %17 {strides = array<i32>} : memref<32x256xf32, #tpu.memory_space<vmem>>, vector<32x256xf32>,
    } else {
    }
    return
  }
  func.func @transform_0(%arg0: i32, %arg1: i32, %arg2: i32) -> (i32, i32) {
    %c0_i32 = arith.constant 0 : i32
    return %arg0, %arg2 : i32, i32
  }
  func.func @transform_1(%arg0: i32, %arg1: i32, %arg2: i32) -> (i32, i32) {
    %c0_i32 = arith.constant 0 : i32
    return %arg2, %arg1 : i32, i32
  }
  func.func @transform_2(%arg0: i32, %arg1: i32, %arg2: i32) -> (i32, i32) {
    %c0_i32 = arith.constant 0 : i32
    %c0_i32_0 = arith.constant 0 : i32
    return %c0_i32, %arg1 : i32, i32
  }
  func.func @transform_3(%arg0: i32, %arg1: i32, %arg2: i32) -> (i32, i32) {
    %c0_i32 = arith.constant 0 : i32
    return %arg0, %arg1 : i32, i32
  }
}

</mosaic_0001>

<bundles_post_ra>
// kernel: _linear_block_fwd.1
= control target key start
LH: loop header
LB: loop body
LE: loop exit
PB: predicated region body
PF: predicated region fallthrough
CT: control target
= control target key end

     0   :  { %8 = vsyncpa [#allocation4], 0  ;;  %s470_s0 = inlined_call_operand.vmem [shape: bf16[32,128], index: 0, kind: input, shape index: {}]   ;;  %s471_s1 = inlined_call_operand.hbm [shape: bf16[128,256], index: 1, kind: input, shape index: {}]   ;;  %s472_s2 = inlined_call_operand.vmem [shape: f32[1,256], index: 2, kind: input, shape index: {}]   ;;  %s473_s3 = inlined_call_operand.hbm [shape: f32[32,256], index: 3, kind: output, shape index: {}]  }
   0x1   :  { %9 = vsyncpa [#allocation5], 0  ;;  %s410_s12 = smov [#allocation3]   ;;  %s362_s16 = scalar_lea.hbm %s471_s1, 2048 }
   0x2   :  { %s17_s13 = sshll.u32 %s410_s12, 4  ;;  %p363_p0 = scmp.ne.s32.totalorder %s471_s1, %s362_s16  ;;  %s18_s13 = int_to_ptr.vmem [resolvable:$true] %s17_s13 }
   0x3   :  { %p366_p1 = scmp.lt.u32.totalorder %s362_s16, %s471_s1 }
   0x5   :  { %p368_p2 = pnand %p366_p1, %p363_p0 }
   0x7   :  { %371 = shalt.err (!%p368_p2)
}
   0x8   :  { %s372_s21 = scalar_lea.vmem %s18_s13, 2048  ;;  %p377_p4 = scmp.lt.s32.totalorder %s18_s13, %s18_s13 }
   0x9   :  { %p373_p3 = scmp.ne.s32.totalorder %s18_s13, %s372_s21  ;;  %p378_p5 = scmp.lt.s32.totalorder %s372_s21, %s372_s21 }
   0xb   :  { %p379_p6 = por %p378_p5, %p377_p4 }
   0xd   :  { %p380_p7 = pnand %p379_p6, %p373_p3 }
   0xf   :  { %383 = shalt.err (!%p380_p7)
}
  0x10   :  { %s411_s22 = smov 128   ;;  %s412_s23 = smov 8  }
  0x11   :  { %23 = dma.hbm_to_vmem [thread:$0]  %s471_s1, 2048, %s18_s13, [#allocation4], %s411_s22, %s411_s22, %s412_s23  }
  0x12   :  { %406 = dma.done.wait [#allocation4], 2048  }
  0x13   :  { %407 = vsyncadd [#allocation4], 4294965248  ;;  %v413_v0 = vmov 0   ;;  %v336_v1 = vld [vmem:[#allocation3 + $0x4] ss:$8 sps:$4 sm:$0xff]   ;;  %v360_v17 = vld [vmem:[%s470_s0] sm:$0xff]   ;;  %v244_v19 = vlaneseq }
  0x14   :  { %194 = vmatprep.mubr.bf16.mxu0 %v413_v0  ;;  %204 = vmatprep.mubr.bf16.mxu1 %v413_v0  ;;  %v338_v2 = vld [vmem:[#allocation3] ss:$8 sps:$4 sm:$0xff]   ;;  %v339_v3 = vld [vmem:[#allocation3 + $0x14] ss:$8 sps:$4 sm:$0xff]   ;;  %v341_v4 = vld [vmem:[#allocation3 + $0x10] ss:$8 sps:$4 sm:$0xff]  }
  0x15   :  { %162 = vmatprep.subr.bf16.mxu0 %v336_v1  ;;  %313 = vmatprep.subr.bf16.mxu1 %v336_v1  ;;  %v342_v5 = vld [vmem:[#allocation3 + $0x24] ss:$8 sps:$4 sm:$0xff]   ;;  %v344_v6 = vld [vmem:[#allocation3 + $0x20] ss:$8 sps:$4 sm:$0xff]   ;;  %v345_v7 = vld [vmem:[#allocation3 + $0x34] ss:$8 sps:$4 sm:$0xff]  }
  0x16   :  { %163 = vmatpush1.bf16.msra.mxu0 %v338_v2  ;;  %321 = vmatpush1.bf16.msra.mxu1 %v338_v2  ;;  %v347_v8 = vld [vmem:[#allocation3 + $0x30] ss:$8 sps:$4 sm:$0xff]   ;;  %v348_v9 = vld [vmem:[#allocation3 + $0x44] ss:$8 sps:$4 sm:$0xff]   ;;  %v350_v10 = vld [vmem:[#allocation3 + $0x40] ss:$8 sps:$4 sm:$0xff]  }
  0x17   :  { %164 = vmatprep.subr.bf16.mxu0 %v339_v3  ;;  %314 = vmatprep.subr.bf16.mxu1 %v339_v3  ;;  %v351_v11 = vld [vmem:[#allocation3 + $0x54] ss:$8 sps:$4 sm:$0xff]   ;;  %v353_v12 = vld [vmem:[#allocation3 + $0x50] ss:$8 sps:$4 sm:$0xff]   ;;  %v354_v13 = vld [vmem:[#allocation3 + $0x64] ss:$8 sps:$4 sm:$0xff]  }
  0x18   :  { %v356_v14 = vld [vmem:[#allocation3 + $0x60] ss:$8 sps:$4 sm:$0xff]   ;;  %v357_v15 = vld [vmem:[#allocation3 + $0x74] ss:$8 sps:$4 sm:$0xff]   ;;  %v359_v16 = vld [vmem:[#allocation3 + $0x70] ss:$8 sps:$4 sm:$0xff]  }
  0x19   :  { %v361_v18 = vld [vmem:[%s470_s0 + $0x8] sm:$0xff]   ;;  %v245_v20 = vshrl.u32 %v244_v19, 7  ;;  %v242_v22 = vld [vmem:[%s472_s2] sm:$0x3]  ;;  %s414_s0 = smov [#allocation6]  }
  0x1a   :  { %165 = vmatpush1.bf16.msra.mxu0 %v341_v4  ;;  %322 = vmatpush1.bf16.msra.mxu1 %v341_v4  ;;  %s283_s4 = sshll.u32 %s414_s0, 4  ;;  %s284_s4 = int_to_ptr.vmem [resolvable:$true] %s283_s4 }
  0x1b   :  { %166 = vmatprep.subr.bf16.mxu0 %v342_v5  ;;  %315 = vmatprep.subr.bf16.mxu1 %v342_v5  ;;  %v246_v21 = vsub.s32 0, %v245_v20  ;;  %v250_v23 = vsub.s32 1, %v245_v20  ;;  %s384_s2 = scalar_lea.vmem %s284_s4, 1024  ;;  %p389_p9 = scmp.lt.s32.totalorder %s284_s4, %s284_s4 }
  0x1c   :  { %p385_p8 = scmp.ne.s32.totalorder %s284_s4, %s384_s2  ;;  %p390_p10 = scmp.lt.s32.totalorder %s384_s2, %s384_s2 }
  0x1d   :  { %v247_v24 = vrot.slane %v242_v22, %v246_v21  ;;  %v251_v25 = vrot.slane %v242_v22, %v250_v23 }
  0x1e   :  { %167 = vmatpush1.bf16.msra.mxu0 %v344_v6  ;;  %323 = vmatpush1.bf16.msra.mxu1 %v344_v6  ;;  %p391_p11 = por %p390_p10, %p389_p9 }
  0x1f   :  { %168 = vmatprep.subr.bf16.mxu0 %v345_v7  ;;  %316 = vmatprep.subr.bf16.mxu1 %v345_v7 }
  0x20   :  { %p392_p12 = pnand %p391_p11, %p385_p8 }
  0x22   :  { %169 = vmatpush1.bf16.msra.mxu0 %v347_v8  ;;  %324 = vmatpush1.bf16.msra.mxu1 %v347_v8 }
  0x23   :  { %170 = vmatprep.subr.bf16.mxu0 %v348_v9  ;;  %317 = vmatprep.subr.bf16.mxu1 %v348_v9 }
  0x26   :  { %171 = vmatpush1.bf16.msra.mxu0 %v350_v10  ;;  %325 = vmatpush1.bf16.msra.mxu1 %v350_v10 }
  0x27   :  { %172 = vmatprep.subr.bf16.mxu0 %v351_v11  ;;  %318 = vmatprep.subr.bf16.mxu1 %v351_v11 }
  0x2a   :  { %173 = vmatpush1.bf16.msra.mxu0 %v353_v12  ;;  %326 = vmatpush1.bf16.msra.mxu1 %v353_v12 }
  0x2b   :  { %174 = vmatprep.subr.bf16.mxu0 %v354_v13  ;;  %319 = vmatprep.subr.bf16.mxu1 %v354_v13 }
  0x2e   :  { %175 = vmatpush1.bf16.msra.mxu0 %v356_v14  ;;  %327 = vmatpush1.bf16.msra.mxu1 %v356_v14 }
  0x2f   :  { %176 = vmatprep.subr.bf16.mxu0 %v357_v15  ;;  %320 = vmatprep.subr.bf16.mxu1 %v357_v15 }
  0x32   :  { %177 = vmatpush1.bf16.msra.mxu0 %v359_v16  ;;  %328 = vmatpush1.bf16.msra.mxu1 %v359_v16 }
  0x35   :  { %195 = vmatmul.mubr.bf16.vlgmr.msra.gmra.mrb[0].mxu0 %v360_v17  ;;  %205 = vmatmul.mubr.bf16.vlgmr.msra.gmra.mrb[0].mxu1 %v361_v18 }
 0x108   :  { %v196_v26 = vpop.f32.mrb[0].mxu0  ;;  %v206_v27 = vpop.f32.mrb[0].mxu1 }
 0x109   :  { %v254_v28 = vadd.f32 %v247_v24, %v196_v26  ;;  %v258_v29 = vadd.f32 %v247_v24, %v206_v27  ;;  %v198_v30 = vpop.f32.mrb[1].mxu0  ;;  %v208_v31 = vpop.f32.mrb[1].mxu1 }
 0x10a   :  { %v255_v32 = vadd.f32 %v251_v25, %v198_v30  ;;  %v259_v33 = vadd.f32 %v251_v25, %v208_v31  ;;  %v200_v34 = vpop.f32.mrb[2].mxu0  ;;  %v210_v35 = vpop.f32.mrb[2].mxu1 }
 0x10b   :  { %v262_v36 = vmax.f32 %v254_v28, 0.0  ;;  %v266_v37 = vmax.f32 %v258_v29, 0.0  ;;  %v256_v38 = vadd.f32 %v247_v24, %v200_v34  ;;  %v260_v39 = vadd.f32 %v247_v24, %v210_v35  ;;  %v202_v40 = vpop.f32.mrb[3].mxu0  ;;  %v212_v41 = vpop.f32.mrb[3].mxu1 }
 0x10c   :  { %v263_v42 = vmax.f32 %v255_v32, 0.0  ;;  %v267_v43 = vmax.f32 %v259_v33, 0.0  ;;  %v257_v44 = vadd.f32 %v251_v25, %v202_v40  ;;  %v261_v45 = vadd.f32 %v251_v25, %v212_v41 }
 0x10d   :  { %270 = vst [vmem:[#allocation6] sm:$0xff] %v262_v36  ;;  %274 = vst [vmem:[#allocation6 + $0x20] sm:$0xff] %v266_v37  ;;  %v264_v46 = vmax.f32 %v256_v38, 0.0  ;;  %v268_v47 = vmax.f32 %v260_v39, 0.0 }
 0x10e   :  { %271 = vst [vmem:[#allocation6 + $0x8] sm:$0xff] %v263_v42  ;;  %275 = vst [vmem:[#allocation6 + $0x28] sm:$0xff] %v267_v43  ;;  %v265_v48 = vmax.f32 %v257_v44, 0.0  ;;  %v269_v49 = vmax.f32 %v261_v45, 0.0 }
 0x10f   :  { %272 = vst [vmem:[#allocation6 + $0x10] sm:$0xff] %v264_v46  ;;  %276 = vst [vmem:[#allocation6 + $0x30] sm:$0xff] %v268_v47 }
 0x110   :  { %273 = vst [vmem:[#allocation6 + $0x18] sm:$0xff] %v265_v48  ;;  %277 = vst [vmem:[#allocation6 + $0x38] sm:$0xff] %v269_v49 }
 0x111   :  { %395 = shalt.err (!%p392_p12)
}
 0x112   :  { %s396_s7 = scalar_lea.hbm %s473_s3, 1024 }
 0x113   :  { %p397_p13 = scmp.ne.s32.totalorder %s473_s3, %s396_s7  ;;  %p400_p0 = scmp.lt.u32.totalorder %s396_s7, %s473_s3 }
 0x115   :  { %p402_p1 = pnand %p400_p0, %p397_p13 }
 0x117   :  { %405 = shalt.err (!%p402_p1)
}
 0x118   :  { %s415_s12 = smov 256   ;;  %s416_s13 = smov 16  }
 0x119   :  { %289 = dma.vmem_to_hbm [thread:$0]  %s284_s4, 1024, %s473_s3, [#allocation5], %s415_s12, %s415_s12, %s416_s13  }
 0x11a   :  { %408 = dma.done.wait [#allocation5], 1024  }
 0x11b   :  { %409 = vsyncadd [#allocation5], 4294966272 }
 0x11c   :  { %293 = vsyncpa [#allocation4], 1 }
 0x11d   :  { %294 = vsyncpa [#allocation5], 1 }

</bundles_post_ra>
